<compile_context>
chip_gen: v7x
topology: tpu7x:2x2x1
jax: 0.10.0
libtpu: 0.0.40
codegen_flags: <defaults>
</compile_context>

<pallas_src>
import jax
import jax.numpy as jnp
from jax.experimental import pallas as pl
from jax.experimental.pallas import tpu as pltpu

LN_EPS = 1e-5  # PyTorch nn.LayerNorm default


def _round_up(n, m):
    return ((n + m - 1) // m) * m


def _ln_relu(z, g, be):
    """LayerNorm over features (sublane axis) -> affine -> ReLU, all f32.

    z: (H, bt) f32, g/be: (H, 1) f32.
    """
    mu = jnp.mean(z, axis=0, keepdims=True)             # (1, bt)
    zc = z - mu                                         # reused for var + norm
    var = jnp.mean(zc * zc, axis=0, keepdims=True)      # (1, bt)
    zn = zc * jax.lax.rsqrt(var + LN_EPS)
    return jnp.maximum(zn * g + be, 0.0)


def custom_nn_kernel(x_ref, w1_ref, w23_ref, wo_ref, vec_ref, o_ref):
    # x_ref:   (bt, I)   bf16  batch-major input tile (no wrapper transpose)
    # w1_ref:  (H, I)    bf16  PyTorch (out, in) layout
    # w23_ref: (2, H, H) bf16
    # wo_ref:  (O, H)    bf16
    # vec_ref: (H, 10)   f32  columns = [b1 g1 be1 b2 g2 be2 b3 g3 be3 bo(padded)]
    v = vec_ref[...]

    # ---- layer 1: Linear -> LayerNorm -> ReLU.  Contract w1 (H, I) against the
    # batch-major x tile (bt, I) over I: the MXU consumes the transposed operand
    # directly and the result lands in (features, batch) layout.
    z = jax.lax.dot_general(
        w1_ref[...], x_ref[...],
        dimension_numbers=(((1,), (1,)), ((), ())),
        preferred_element_type=jnp.float32) + v[:, 0:1]              # (H, bt)
    h = _ln_relu(z, v[:, 1:2], v[:, 2:3])

    # ---- layers 2 & 3: bf16 MXU operands, f32 accumulate / LN / ReLU.
    z = jnp.dot(w23_ref[0], h.astype(jnp.bfloat16),
                preferred_element_type=jnp.float32) + v[:, 3:4]
    h = _ln_relu(z, v[:, 4:5], v[:, 5:6])
    z = jnp.dot(w23_ref[1], h.astype(jnp.bfloat16),
                preferred_element_type=jnp.float32) + v[:, 6:7]
    h = _ln_relu(z, v[:, 7:8], v[:, 8:9])

    # ---- output Linear + exact Sigmoid (o_type == BINARY).
    o = wo_ref.shape[0]
    logits = jnp.dot(wo_ref[...], h.astype(jnp.bfloat16),
                     preferred_element_type=jnp.float32) + v[:o, 9:10]
    # exp rides the EUP slot; the divide is exact f32 (no approx reciprocal).
    o_ref[...] = 1.0 / (1.0 + jnp.exp(-logits))


def custom_nn_forward(pa, u, params, *, batch_tile=512):
    """Mirrors CustomNN.forward for the real-only-parents / BINARY-output config."""
    # ----- glue: same concat ordering as forward() (sorted real parents, then sorted u)
    inp_pa = jnp.concatenate([pa[k] for k in sorted(pa)], axis=1)
    inp_u = jnp.concatenate([u[k] for k in sorted(u)], axis=1)
    x = jnp.concatenate([inp_pa, inp_u], axis=1)

    B, I = x.shape
    H = params["w1"].shape[1]
    O = params["wo"].shape[1]

    # Batch tile: multiple of 128 (lane-dense output store), capped at batch_tile
    # (keeps (H, bt) f32 intermediates inside the vreg file), and capped at ~B/2
    # so mid/large batches give >= 2 grid steps (megacore split on v7x).
    bt = min(_round_up(batch_tile, 128), _round_up(-(-B // 2), 128))
    B_pad = _round_up(B, bt)

    # Row-pad only (no transposed copy materialized in HBM); bf16 MXU operands.
    x_b = x.astype(jnp.bfloat16)
    if B_pad != B:
        x_b = jnp.zeros((B_pad, I), jnp.bfloat16).at[:B].set(x_b)

    # Pack parameters once (tiny): weights in PyTorch (out, in) layout as bf16,
    # all small per-layer vectors into one (H, 10) f32 slab.
    w1 = params["w1"].T.astype(jnp.bfloat16)                                 # (H, I)
    w23 = jnp.stack([params["w2"].T, params["w3"].T]).astype(jnp.bfloat16)   # (2, H, H)
    wo = params["wo"].T.astype(jnp.bfloat16)                                 # (O, H)
    bo_col = jnp.zeros((H,), jnp.float32).at[:O].set(params["bo"].reshape(-1))
    vecs = jnp.stack(
        [params["b1"].reshape(-1), params["g1"].reshape(-1), params["be1"].reshape(-1),
         params["b2"].reshape(-1), params["g2"].reshape(-1), params["be2"].reshape(-1),
         params["b3"].reshape(-1), params["g3"].reshape(-1), params["be3"].reshape(-1),
         bo_col],
        axis=1).astype(jnp.float32)                                          # (H, 10)

    grid = (B_pad // bt,)
    out_t = pl.pallas_call(
        custom_nn_kernel,
        out_shape=jax.ShapeDtypeStruct((O, B_pad), jnp.float32),
        grid=grid,
        in_specs=[
            pl.BlockSpec((bt, I), lambda i: (i, 0)),         # x tile, batch-major
            pl.BlockSpec((H, I), lambda i: (0, 0)),          # w1 (constant block)
            pl.BlockSpec((2, H, H), lambda i: (0, 0, 0)),    # w2/w3 stacked
            pl.BlockSpec((O, H), lambda i: (0, 0)),          # wo
            pl.BlockSpec((H, 10), lambda i: (0, 0)),         # packed bias/LN vectors
        ],
        out_specs=pl.BlockSpec((O, bt), lambda i: (0, i)),   # lane-dense output store
        compiler_params=pltpu.CompilerParams(
            dimension_semantics=("parallel",)),              # megacore split on v7x
    )(x_b, w1, w23, wo, vecs)

    return out_t[:, :B].T                                    # back to (B, O)


def init_params(key, real_i_size, h_size, o_size, h_layers=3):
    """Deterministic synthetic init (matches module shapes; not a checkpoint load)."""
    params = {}
    dims = [real_i_size] + [h_size] * h_layers
    keys = jax.random.split(key, h_layers + 1)
    for l in range(h_layers):
        fan_in = dims[l]
        params[f"w{l + 1}"] = (jax.random.normal(keys[l], (dims[l], h_size), jnp.float32)
                               / jnp.sqrt(jnp.float32(fan_in)))
        params[f"b{l + 1}"] = jnp.zeros((1, h_size), jnp.float32)
        params[f"g{l + 1}"] = jnp.ones((1, h_size), jnp.float32)    # LayerNorm gamma
        params[f"be{l + 1}"] = jnp.zeros((1, h_size), jnp.float32)  # LayerNorm beta
    params["wo"] = (jax.random.normal(keys[-1], (h_size, o_size), jnp.float32)
                    / jnp.sqrt(jnp.float32(h_size)))
    params["bo"] = jnp.zeros((1, o_size), jnp.float32)
    return params


def reference_forward(pa, u, params):
    """Pure-JAX reference of the same forward pass, using the same TPU-native
    matmul numerics as the kernel (bf16 MXU operands, f32 accumulation, f32
    LayerNorm / ReLU / sigmoid).  Bit-parity with PyTorch f32 Linear would need
    full-f32 contraction (precision=HIGHEST); the bf16 operand width is the
    standard TPU matmul precision."""
    inp_pa = jnp.concatenate([pa[k] for k in sorted(pa)], axis=1)
    inp_u = jnp.concatenate([u[k] for k in sorted(u)], axis=1)
    h = jnp.concatenate([inp_pa, inp_u], axis=1).astype(jnp.float32)
    for l in range(1, 4):
        z = jnp.dot(h.astype(jnp.bfloat16), params[f"w{l}"].astype(jnp.bfloat16),
                    preferred_element_type=jnp.float32) + params[f"b{l}"]
        mu = z.mean(-1, keepdims=True)
        zc = z - mu
        var = (zc * zc).mean(-1, keepdims=True)
        h = jnp.maximum(zc * jax.lax.rsqrt(var + LN_EPS) * params[f"g{l}"]
                        + params[f"be{l}"], 0.0)
    logits = jnp.dot(h.astype(jnp.bfloat16), params["wo"].astype(jnp.bfloat16),
                     preferred_element_type=jnp.float32) + params["bo"]
    return 1.0 / (1.0 + jnp.exp(-logits))


if __name__ == "__main__":
    key = jax.random.PRNGKey(0)
    k_x1, k_x2, k_u1, k_par = jax.random.split(key, 4)

    B = 16
    pa = {"x1": jax.random.normal(k_x1, (B, 6), jnp.float32),
          "x2": jax.random.normal(k_x2, (B, 6), jnp.float32)}
    u = {"u1": jax.random.normal(k_u1, (B, 4), jnp.float32)}

    real_i_size = 6 + 6 + 4   # pa_size["x1"] + pa_size["x2"] + u_size["u1"]
    h_size, o_size, h_layers = 32, 8, 3
    params = init_params(k_par, real_i_size, h_size, o_size, h_layers)

    out = custom_nn_forward(pa, u, params)
    out = jax.block_until_ready(out)

    ref = reference_forward(pa, u, params)
    assert out.shape == (B, o_size)
    # Kernel and reference share the same pinned numerics (bf16 matmul operands,
    # f32 everything else, exact sigmoid); residual diff is accumulation-order
    # level (~1e-6), so 1e-3 has a wide margin.
    assert jnp.allclose(out, ref, atol=1e-3, rtol=1e-3), "mismatch vs JAX reference"

    print("KERNEL_OK")
</pallas_src>

<mosaic_0001>
module attributes {stable_mosaic.version = 11 : i64} {
  func.func @custom_nn_kernel(%arg0: i32, %arg1: memref<128x16xbf16, #tpu.memory_space<vmem>>, %arg2: memref<32x16xbf16, #tpu.memory_space<vmem>>, %arg3: memref<2x32x32xbf16, #tpu.memory_space<vmem>>, %arg4: memref<8x32xbf16, #tpu.memory_space<vmem>>, %arg5: memref<32x10xf32, #tpu.memory_space<vmem>>, %arg6: memref<8x128xf32, #tpu.memory_space<vmem>>) attributes {dimension_semantics = [#tpu.dimension_semantics<parallel>], iteration_bounds = array<i64: 1>, scalar_prefetch = 0 : i64, scratch_operands = 0 : i64, tpu.core_type = #tpu.core_type<tc>, window_params = [{transform_indices = @transform_0, window_bounds = array<i64: 128, 16>}, {pipeline_mode = #tpu.pipeline_mode<synchronous>, transform_indices = @transform_1, window_bounds = array<i64: 32, 16>}, {pipeline_mode = #tpu.pipeline_mode<synchronous>, transform_indices = @transform_2, window_bounds = array<i64: 2, 32, 32>}, {pipeline_mode = #tpu.pipeline_mode<synchronous>, transform_indices = @transform_3, window_bounds = array<i64: 8, 32>}, {pipeline_mode = #tpu.pipeline_mode<synchronous>, transform_indices = @transform_4, window_bounds = array<i64: 32, 10>}, {transform_indices = @transform_5, window_bounds = array<i64: 8, 128>}]} {
    %c0 = arith.constant 0 : index
    %c0_0 = arith.constant 0 : index
    %0 = vector.load %arg5[%c0, %c0_0] : memref<32x10xf32, #tpu.memory_space<vmem>>, vector<32x10xf32>
    %c0_1 = arith.constant 0 : index
    %c0_2 = arith.constant 0 : index
    %1 = vector.load %arg2[%c0_1, %c0_2] : memref<32x16xbf16, #tpu.memory_space<vmem>>, vector<32x16xbf16>
    %c0_3 = arith.constant 0 : index
    %c0_4 = arith.constant 0 : index
    %2 = vector.load %arg1[%c0_3, %c0_4] : memref<128x16xbf16, #tpu.memory_space<vmem>>, vector<128x16xbf16>
    %cst = arith.constant dense<0.000000e+00> : vector<32x128xf32>
    %3 = tpu.matmul %1, %2, %cst {dimension_numbers = #tpu.dot_dimension_numbers<[1], [1], [0], [0], [0, 0, 1, 0], [], []>} : vector<32x16xbf16>, vector<128x16xbf16>, vector<32x128xf32> -> vector<32x128xf32>
    %4 = vector.extract_strided_slice %0 {offsets = [0, 0], sizes = [32, 1], strides = [1, 1]} : vector<32x10xf32> to vector<32x1xf32>
    %5 = vector.broadcast %4 : vector<32x1xf32> to vector<32x128xf32>
    %6 = arith.addf %3, %5 : vector<32x128xf32>
    %7 = vector.extract_strided_slice %0 {offsets = [0, 1], sizes = [32, 1], strides = [1, 1]} : vector<32x10xf32> to vector<32x1xf32>
    %8 = vector.extract_strided_slice %0 {offsets = [0, 2], sizes = [32, 1], strides = [1, 1]} : vector<32x10xf32> to vector<32x1xf32>
    %cst_5 = arith.constant dense<0.000000e+00> : vector<128xf32>
    %9 = vector.multi_reduction <add>, %6, %cst_5 [0] : vector<32x128xf32> to vector<128xf32>
    %10 = vector.shape_cast %9 : vector<128xf32> to vector<1x128xf32>
    %cst_6 = arith.constant 3.200000e+01 : f32
    %11 = vector.broadcast %cst_6 : f32 to vector<1x128xf32>
    %12 = arith.divf %10, %11 : vector<1x128xf32>
    %13 = vector.broadcast %12 : vector<1x128xf32> to vector<32x128xf32>
    %14 = arith.subf %6, %13 : vector<32x128xf32>
    %15 = arith.mulf %14, %14 : vector<32x128xf32>
    %cst_7 = arith.constant dense<0.000000e+00> : vector<128xf32>
    %16 = vector.multi_reduction <add>, %15, %cst_7 [0] : vector<32x128xf32> to vector<128xf32>
    %17 = vector.shape_cast %16 : vector<128xf32> to vector<1x128xf32>
    %cst_8 = arith.constant 3.200000e+01 : f32
    %18 = vector.broadcast %cst_8 : f32 to vector<1x128xf32>
    %19 = arith.divf %17, %18 : vector<1x128xf32>
    %cst_9 = arith.constant 9.99999974E-6 : f32
    %20 = vector.broadcast %cst_9 : f32 to vector<1x128xf32>
    %21 = arith.addf %19, %20 : vector<1x128xf32>
    %22 = math.rsqrt %21 : vector<1x128xf32>
    %23 = vector.broadcast %22 : vector<1x128xf32> to vector<32x128xf32>
    %24 = arith.mulf %14, %23 : vector<32x128xf32>
    %25 = vector.broadcast %7 : vector<32x1xf32> to vector<32x128xf32>
    %26 = arith.mulf %24, %25 : vector<32x128xf32>
    %27 = vector.broadcast %8 : vector<32x1xf32> to vector<32x128xf32>
    %28 = arith.addf %26, %27 : vector<32x128xf32>
    %cst_10 = arith.constant 0.000000e+00 : f32
    %29 = vector.broadcast %cst_10 : f32 to vector<32x128xf32>
    %30 = arith.maximumf %28, %29 : vector<32x128xf32>
    %c0_11 = arith.constant 0 : index
    %c0_12 = arith.constant 0 : index
    %c0_13 = arith.constant 0 : index
    %31 = vector.load %arg3[%c0_11, %c0_12, %c0_13] : memref<2x32x32xbf16, #tpu.memory_space<vmem>>, vector<1x32x32xbf16>
    %32 = vector.shape_cast %31 : vector<1x32x32xbf16> to vector<32x32xbf16>
    %33 = arith.truncf %30 : vector<32x128xf32> to vector<32x128xbf16>
    %cst_14 = arith.constant dense<0.000000e+00> : vector<32x128xf32>
    %34 = tpu.matmul %32, %33, %cst_14 {dimension_numbers = #tpu.dot_dimension_numbers<[1], [0], [0], [1], [0, 0, 1, 1], [], []>} : vector<32x32xbf16>, vector<32x128xbf16>, vector<32x128xf32> -> vector<32x128xf32>
    %35 = vector.extract_strided_slice %0 {offsets = [0, 3], sizes = [32, 1], strides = [1, 1]} : vector<32x10xf32> to vector<32x1xf32>
    %36 = vector.broadcast %35 : vector<32x1xf32> to vector<32x128xf32>
    %37 = arith.addf %34, %36 : vector<32x128xf32>
    %38 = vector.extract_strided_slice %0 {offsets = [0, 4], sizes = [32, 1], strides = [1, 1]} : vector<32x10xf32> to vector<32x1xf32>
    %39 = vector.extract_strided_slice %0 {offsets = [0, 5], sizes = [32, 1], strides = [1, 1]} : vector<32x10xf32> to vector<32x1xf32>
    %cst_15 = arith.constant dense<0.000000e+00> : vector<128xf32>
    %40 = vector.multi_reduction <add>, %37, %cst_15 [0] : vector<32x128xf32> to vector<128xf32>
    %41 = vector.shape_cast %40 : vector<128xf32> to vector<1x128xf32>
    %cst_16 = arith.constant 3.200000e+01 : f32
    %42 = vector.broadcast %cst_16 : f32 to vector<1x128xf32>
    %43 = arith.divf %41, %42 : vector<1x128xf32>
    %44 = vector.broadcast %43 : vector<1x128xf32> to vector<32x128xf32>
    %45 = arith.subf %37, %44 : vector<32x128xf32>
    %46 = arith.mulf %45, %45 : vector<32x128xf32>
    %cst_17 = arith.constant dense<0.000000e+00> : vector<128xf32>
    %47 = vector.multi_reduction <add>, %46, %cst_17 [0] : vector<32x128xf32> to vector<128xf32>
    %48 = vector.shape_cast %47 : vector<128xf32> to vector<1x128xf32>
    %cst_18 = arith.constant 3.200000e+01 : f32
    %49 = vector.broadcast %cst_18 : f32 to vector<1x128xf32>
    %50 = arith.divf %48, %49 : vector<1x128xf32>
    %cst_19 = arith.constant 9.99999974E-6 : f32
    %51 = vector.broadcast %cst_19 : f32 to vector<1x128xf32>
    %52 = arith.addf %50, %51 : vector<1x128xf32>
    %53 = math.rsqrt %52 : vector<1x128xf32>
    %54 = vector.broadcast %53 : vector<1x128xf32> to vector<32x128xf32>
    %55 = arith.mulf %45, %54 : vector<32x128xf32>
    %56 = vector.broadcast %38 : vector<32x1xf32> to vector<32x128xf32>
    %57 = arith.mulf %55, %56 : vector<32x128xf32>
    %58 = vector.broadcast %39 : vector<32x1xf32> to vector<32x128xf32>
    %59 = arith.addf %57, %58 : vector<32x128xf32>
    %cst_20 = arith.constant 0.000000e+00 : f32
    %60 = vector.broadcast %cst_20 : f32 to vector<32x128xf32>
    %61 = arith.maximumf %59, %60 : vector<32x128xf32>
    %c1 = arith.constant 1 : index
    %c0_21 = arith.constant 0 : index
    %c0_22 = arith.constant 0 : index
    %62 = vector.load %arg3[%c1, %c0_21, %c0_22] : memref<2x32x32xbf16, #tpu.memory_space<vmem>>, vector<1x32x32xbf16>
    %63 = vector.shape_cast %62 : vector<1x32x32xbf16> to vector<32x32xbf16>
    %64 = arith.truncf %61 : vector<32x128xf32> to vector<32x128xbf16>
    %cst_23 = arith.constant dense<0.000000e+00> : vector<32x128xf32>
    %65 = tpu.matmul %63, %64, %cst_23 {dimension_numbers = #tpu.dot_dimension_numbers<[1], [0], [0], [1], [0, 0, 1, 1], [], []>} : vector<32x32xbf16>, vector<32x128xbf16>, vector<32x128xf32> -> vector<32x128xf32>
    %66 = vector.extract_strided_slice %0 {offsets = [0, 6], sizes = [32, 1], strides = [1, 1]} : vector<32x10xf32> to vector<32x1xf32>
    %67 = vector.broadcast %66 : vector<32x1xf32> to vector<32x128xf32>
    %68 = arith.addf %65, %67 : vector<32x128xf32>
    %69 = vector.extract_strided_slice %0 {offsets = [0, 7], sizes = [32, 1], strides = [1, 1]} : vector<32x10xf32> to vector<32x1xf32>
    %70 = vector.extract_strided_slice %0 {offsets = [0, 8], sizes = [32, 1], strides = [1, 1]} : vector<32x10xf32> to vector<32x1xf32>
    %cst_24 = arith.constant dense<0.000000e+00> : vector<128xf32>
    %71 = vector.multi_reduction <add>, %68, %cst_24 [0] : vector<32x128xf32> to vector<128xf32>
    %72 = vector.shape_cast %71 : vector<128xf32> to vector<1x128xf32>
    %cst_25 = arith.constant 3.200000e+01 : f32
    %73 = vector.broadcast %cst_25 : f32 to vector<1x128xf32>
    %74 = arith.divf %72, %73 : vector<1x128xf32>
    %75 = vector.broadcast %74 : vector<1x128xf32> to vector<32x128xf32>
    %76 = arith.subf %68, %75 : vector<32x128xf32>
    %77 = arith.mulf %76, %76 : vector<32x128xf32>
    %cst_26 = arith.constant dense<0.000000e+00> : vector<128xf32>
    %78 = vector.multi_reduction <add>, %77, %cst_26 [0] : vector<32x128xf32> to vector<128xf32>
    %79 = vector.shape_cast %78 : vector<128xf32> to vector<1x128xf32>
    %cst_27 = arith.constant 3.200000e+01 : f32
    %80 = vector.broadcast %cst_27 : f32 to vector<1x128xf32>
    %81 = arith.divf %79, %80 : vector<1x128xf32>
    %cst_28 = arith.constant 9.99999974E-6 : f32
    %82 = vector.broadcast %cst_28 : f32 to vector<1x128xf32>
    %83 = arith.addf %81, %82 : vector<1x128xf32>
    %84 = math.rsqrt %83 : vector<1x128xf32>
    %85 = vector.broadcast %84 : vector<1x128xf32> to vector<32x128xf32>
    %86 = arith.mulf %76, %85 : vector<32x128xf32>
    %87 = vector.broadcast %69 : vector<32x1xf32> to vector<32x128xf32>
    %88 = arith.mulf %86, %87 : vector<32x128xf32>
    %89 = vector.broadcast %70 : vector<32x1xf32> to vector<32x128xf32>
    %90 = arith.addf %88, %89 : vector<32x128xf32>
    %cst_29 = arith.constant 0.000000e+00 : f32
    %91 = vector.broadcast %cst_29 : f32 to vector<32x128xf32>
    %92 = arith.maximumf %90, %91 : vector<32x128xf32>
    %c0_30 = arith.constant 0 : index
    %c0_31 = arith.constant 0 : index
    %93 = vector.load %arg4[%c0_30, %c0_31] : memref<8x32xbf16, #tpu.memory_space<vmem>>, vector<8x32xbf16>
    %94 = arith.truncf %92 : vector<32x128xf32> to vector<32x128xbf16>
    %cst_32 = arith.constant dense<0.000000e+00> : vector<8x128xf32>
    %95 = tpu.matmul %93, %94, %cst_32 {dimension_numbers = #tpu.dot_dimension_numbers<[1], [0], [0], [1], [0, 0, 1, 1], [], []>} : vector<8x32xbf16>, vector<32x128xbf16>, vector<8x128xf32> -> vector<8x128xf32>
    %96 = vector.extract_strided_slice %0 {offsets = [0, 9], sizes = [8, 1], strides = [1, 1]} : vector<32x10xf32> to vector<8x1xf32>
    %97 = vector.broadcast %96 : vector<8x1xf32> to vector<8x128xf32>
    %98 = arith.addf %95, %97 : vector<8x128xf32>
    %cst_33 = arith.constant 0.000000e+00 : f32
    %99 = vector.broadcast %cst_33 : f32 to vector<8x128xf32>
    %100 = arith.subf %99, %98 : vector<8x128xf32>
    %101 = math.exp %100 : vector<8x128xf32>
    %cst_34 = arith.constant 1.000000e+00 : f32
    %102 = vector.broadcast %cst_34 : f32 to vector<8x128xf32>
    %103 = arith.addf %102, %101 : vector<8x128xf32>
    %cst_35 = arith.constant 1.000000e+00 : f32
    %104 = vector.broadcast %cst_35 : f32 to vector<8x128xf32>
    %105 = arith.divf %104, %103 : vector<8x128xf32>
    %c0_36 = arith.constant 0 : index
    %c0_37 = arith.constant 0 : index
    %106 = vector.load %arg6[%c0_36, %c0_37] : memref<8x128xf32, #tpu.memory_space<vmem>>, vector<8x128xf32>
    tpu.vector_store %arg6[%c0_36, %c0_37], %105 {strides = array<i32>} : memref<8x128xf32, #tpu.memory_space<vmem>>, vector<8x128xf32>,
    return
  }
  func.func @transform_0(%arg0: i32) -> (i32, i32) {
    %c0_i32 = arith.constant 0 : i32
    %c0_i32_0 = arith.constant 0 : i32
    return %arg0, %c0_i32 : i32, i32
  }
  func.func @transform_1(%arg0: i32) -> (i32, i32) {
    %c0_i32 = arith.constant 0 : i32
    %c0_i32_0 = arith.constant 0 : i32
    %c0_i32_1 = arith.constant 0 : i32
    return %c0_i32, %c0_i32_0 : i32, i32
  }
  func.func @transform_2(%arg0: i32) -> (i32, i32, i32) {
    %c0_i32 = arith.constant 0 : i32
    %c0_i32_0 = arith.constant 0 : i32
    %c0_i32_1 = arith.constant 0 : i32
    %c0_i32_2 = arith.constant 0 : i32
    return %c0_i32, %c0_i32_0, %c0_i32_1 : i32, i32, i32
  }
  func.func @transform_3(%arg0: i32) -> (i32, i32) {
    %c0_i32 = arith.constant 0 : i32
    %c0_i32_0 = arith.constant 0 : i32
    %c0_i32_1 = arith.constant 0 : i32
    return %c0_i32, %c0_i32_0 : i32, i32
  }
  func.func @transform_4(%arg0: i32) -> (i32, i32) {
    %c0_i32 = arith.constant 0 : i32
    %c0_i32_0 = arith.constant 0 : i32
    %c0_i32_1 = arith.constant 0 : i32
    return %c0_i32, %c0_i32_0 : i32, i32
  }
  func.func @transform_5(%arg0: i32) -> (i32, i32) {
    %c0_i32 = arith.constant 0 : i32
    %c0_i32_0 = arith.constant 0 : i32
    return %c0_i32, %arg0 : i32, i32
  }
}

</mosaic_0001>

<bundles_post_ra>
// kernel: tpu_custom_call.1
= control target key start
LH: loop header
LB: loop body
LE: loop exit
PB: predicated region body
PF: predicated region fallthrough
CT: control target
= control target key end

     0   :  { %vm116_vm0 = vcmask 130048   ;;  %v862_v3 = vmov 0   ;;  %s1045_s0 = inlined_call_operand.vmem [shape: bf16[128,16], index: 0, kind: input, shape index: {}]   ;;  %s1046_s1 = inlined_call_operand.vmem [shape: bf16[32,16], index: 1, kind: input, shape index: {}]   ;;  %s1047_s2 = inlined_call_operand.vmem [shape: bf16[2,32,32], index: 2, kind: input, shape index: {}]   ;;  %s1048_s3 = inlined_call_operand.vmem [shape: bf16[8,32], index: 3, kind: input, shape index: {}]   ;;  %s1049_s4 = inlined_call_operand.vmem [shape: f32[32,10], index: 4, kind: input, shape index: {}]   ;;  %s1050_s5 = inlined_call_operand.hbm [shape: f32[8,128], index: 5, kind: output, shape index: {}]  }
   0x1   :  { %v814_v0 = vld [vmem:[%s1045_s0] sm:$0xff]   ;;  %v815_v1 = vld [vmem:[%s1045_s0 + $0x8] sm:$0xff]   ;;  %789 = vset.pattern.permute.xlu0 %v862_v3  ;;  %790 = vset.pattern.permute.xlu1 %v862_v3  ;;  %v816_v4 = vld [vmem:[%s1045_s0 + $0x10] sm:$0xff]  }
   0x2   :  { %768 = vmatprep.subr.msk.bf16.mxu0 %vm116_vm0, %v814_v0  ;;  %v124_v2 = vsel %vm116_vm0, %v814_v0, 0  ;;  %v127_v5 = vsel %vm116_vm0, %v815_v1, 0  ;;  %v822_v6 = vld [vmem:[%s1046_s1] sm:$0xff]   ;;  %v930_v8 = vld [vmem:[%s1049_s4 + $0x10] sm:$0xff]  ;;  %v935_v9 = vld [vmem:[%s1049_s4 + $0x8] sm:$0xff] }
   0x3   :  { %725 = vmatpush3.bf16.xpose.msra.mxu0 %v124_v2  ;;  %740 = vmatprep.mubr.msk.bf16.mxu0 %vm116_vm0, %v822_v6  ;;  %v925_v7 = vld [vmem:[%s1049_s4] sm:$0xff]  ;;  %v941_v10 = vld [vmem:[%s1049_s4 + $0x18] sm:$0xff] }
   0x4   :  { %769 = vmatprep.subr.msk.bf16.mxu0 %vm116_vm0, %v815_v1  ;;  %48 = vperm.xlu0 %789, %v925_v7  }
   0x5   :  { %58 = vperm.xlu1 %790, %v930_v8  }
   0xb   :  { %727 = vmatpush3.bf16.xpose.msra.mxu0 %v127_v5 }
   0xc   :  { %770 = vmatprep.subr.msk.bf16.mxu0 %vm116_vm0, %v816_v4 }
   0xd   :  { %10 = vsyncpa [#allocation3], 0  ;;  %53 = vperm.xlu0 %789, %v935_v9   ;;  %v130_v11 = vsel %vm116_vm0, %v816_v4, 0  ;;  %v817_v12 = vld [vmem:[%s1045_s0 + $0x18] sm:$0xff]   ;;  %63 = vperm.xlu1 %790, %v941_v10   ;;  %v863_v13 = vmov 1   ;;  %v818_v15 = vld [vmem:[%s1045_s0 + $0x20] sm:$0xff]  }
   0xe   :  { %v133_v14 = vsel %vm116_vm0, %v817_v12, 0  ;;  %v864_v16 = vmov 2   ;;  %v136_v17 = vsel %vm116_vm0, %v818_v15, 0  ;;  %v819_v18 = vld [vmem:[%s1045_s0 + $0x28] sm:$0xff]   ;;  %v820_v20 = vld [vmem:[%s1045_s0 + $0x30] sm:$0xff]   ;;  %v821_v22 = vld [vmem:[%s1045_s0 + $0x38] sm:$0xff]  }
   0xf   :  { %v139_v19 = vsel %vm116_vm0, %v819_v18, 0  ;;  %v142_v21 = vsel %vm116_vm0, %v820_v20, 0  ;;  %v145_v23 = vsel %vm116_vm0, %v821_v22, 0  ;;  %v823_v24 = vld [vmem:[%s1046_s1 + $0x8] sm:$0xff]   ;;  %v824_v25 = vld [vmem:[%s1047_s2] sm:$0xff]   ;;  %vm307_vm1 = vcmask 261120  }
  0x10   :  { %748 = vmatprep.mubr.msk.bf16.mxu1 %vm307_vm1, %v824_v25  ;;  %v865_v26 = vmov 3   ;;  %v866_v27 = vmov 4   ;;  %v867_v28 = vmov 5   ;;  %vm872_vm2 = vmmov 0   ;;  %s874_s27 = smov [#allocation2]  }
  0x11   :  { %791 = vset.pattern.permute.xlu0 %v863_v13  ;;  %792 = vset.pattern.permute.xlu1 %v863_v13  ;;  %s670_s28 = sshll.u32 %s874_s27, 4  ;;  %s671_s28 = int_to_ptr.vmem [resolvable:$true] %s670_s28 }
  0x12   :  { %236 = vperm.xlu1 %792, %v935_v9   ;;  %232 = vperm.xlu0 %791, %v925_v7   ;;  %p843_p1 = scmp.lt.s32.totalorder %s671_s28, %s671_s28 }
  0x13   :  { %729 = vmatpush3.bf16.xpose.msra.mxu0 %v130_v11 }
  0x14   :  { %771 = vmatprep.subr.msk.bf16.mxu0 %vm116_vm0, %v817_v12 }
  0x16   :  { %793 = vset.pattern.permute.xlu1 %v864_v16  ;;  %794 = vset.pattern.permute.xlu0 %v864_v16 }
  0x17   :  { %252 = vperm.xlu1 %793, %v925_v7   ;;  %256 = vperm.xlu0 %794, %v935_v9  }
  0x1b   :  { %731 = vmatpush3.bf16.xpose.msra.mxu0 %v133_v14  ;;  %795 = vset.pattern.permute.xlu1 %v863_v13 }
  0x1c   :  { %772 = vmatprep.subr.msk.bf16.mxu0 %vm116_vm0, %v818_v15  ;;  %260 = vperm.xlu0 %794, %v930_v8  }
  0x1d   :  { %240 = vperm.xlu1 %795, %v930_v8  }
  0x20   :  { %797 = vset.pattern.permute.xlu0 %v865_v26 }
  0x21   :  { %244 = vperm.xlu1 %795, %v941_v10   ;;  %282 = vperm.xlu0 %797, %v925_v7  }
  0x23   :  { %733 = vmatpush3.bf16.xpose.msra.mxu0 %v136_v17 }
  0x24   :  { %773 = vmatprep.subr.msk.bf16.mxu0 %vm116_vm0, %v819_v18 }
  0x25   :  { %796 = vset.pattern.permute.xlu1 %v864_v16  ;;  %294 = vperm.xlu0 %797, %v941_v10  }
  0x26   :  { %264 = vperm.xlu1 %796, %v941_v10  }
  0x29   :  { %800 = vset.pattern.permute.xlu0 %v866_v27 }
  0x2a   :  { %798 = vset.pattern.permute.xlu1 %v865_v26  ;;  %402 = vperm.xlu0 %800, %v935_v9  }
  0x2b   :  { %735 = vmatpush3.bf16.xpose.msra.mxu0 %v139_v19  ;;  %286 = vperm.xlu1 %798, %v935_v9  }
  0x2c   :  { %774 = vmatprep.subr.msk.bf16.mxu0 %vm116_vm0, %v820_v20 }
  0x2e   :  { %406 = vperm.xlu0 %800, %v930_v8  }
  0x2f   :  { %290 = vperm.xlu1 %798, %v930_v8  }
  0x32   :  { %803 = vset.pattern.permute.xlu0 %v867_v28 }
  0x33   :  { %737 = vmatpush3.bf16.xpose.msra.mxu0 %v142_v21  ;;  %799 = vset.pattern.permute.xlu1 %v866_v27 }
  0x34   :  { %775 = vmatprep.subr.msk.bf16.mxu0 %vm116_vm0, %v821_v22  ;;  %398 = vperm.xlu1 %799, %v925_v7  }
  0x35   :  { %426 = vperm.xlu0 %803, %v930_v8  }
  0x38   :  { %801 = vset.pattern.permute.xlu1 %v867_v28 }
  0x39   :  { %418 = vperm.xlu1 %801, %v925_v7  }
  0x3b   :  { %739 = vmatpush3.bf16.xpose.msra.mxu0 %v145_v23 }
  0x3d   :  { %422 = vperm.xlu1 %801, %v935_v9  }
  0x41   :  { %802 = vset.pattern.permute.xlu1 %v866_v27 }
  0x42   :  { %741 = vmatmul.mubr.msk.bf16.vlgmr.msra.gmra.mrb[0].mxu0 %vm116_vm0, %v823_v24  ;;  %410 = vperm.xlu1 %802, %v941_v10  }
  0x46   :  { %804 = vset.pattern.permute.xlu1 %v867_v28 }
  0x47   :  { %430 = vperm.xlu1 %804, %v941_v10  }
  0x83   :  { %v49_v29 = vpop.permute.xlu0 %48 }
  0x84   :  { %v59_v30 = vpop.permute.xlu1 %58 }
  0x8c   :  { %v54_v34 = vpop.permute.xlu0 %53  ;;  %v64_v38 = vpop.permute.xlu1 %63 }
  0x91   :  { %v237_v1 = vpop.permute.xlu1 %236  ;;  %v233_v13 = vpop.permute.xlu0 %232 }
  0x96   :  { %v253_v5 = vpop.permute.xlu1 %252  ;;  %v257_v15 = vpop.permute.xlu0 %256 }
  0x9b   :  { %v261_v22 = vpop.permute.xlu0 %260 }
  0x9c   :  { %v241_v12 = vpop.permute.xlu1 %240 }
  0xa0   :  { %v245_v14 = vpop.permute.xlu1 %244 }
  0xa5   :  { %v265_v21 = vpop.permute.xlu1 %264 }
 0x115   :  { %v742_v31 = vpop.f32.mrb[0].mxu0 }
 0x116   :  { %v181_v32 = vpop.f32.mrb[1].mxu0  ;;  %v190_v39 = vadd.f32 %v742_v31, %v59_v30 }
 0x117   :  { %v743_v33 = vpop.f32.mrb[2].mxu0  ;;  %v182_v36 = vadd.f32 %v181_v32, %v49_v29 }
 0x118   :  { %v184_v35 = vpop.f32.mrb[3].mxu0  ;;  %v193_v41 = vadd.f32 %v743_v33, %v64_v38  ;;  %v826_v38 = vld [vmem:[%s1047_s2 + $0x10] sm:$0xff]  }
 0x119   :  { %v185_v37 = vadd.f32 %v184_v35, %v54_v34 }
 0x11b   :  { %v196_v40 = vadd.f32 %v185_v37, %v182_v36 }
 0x11d   :  { %v197_v42 = vadd.f32 %v196_v40, %v190_v39  ;;  %v869_v40 = vmov 7  }
 0x11f   :  { %v198_v43 = vadd.f32 %v197_v42, %v193_v41  ;;  %v287_v42 = vpop.permute.xlu1 %286 }
 0x121   :  { %v199_v44 = vrot.slane %v198_v43, 4 }
 0x123   :  { %v200_v45 = vadd.f32 %v199_v44, %v198_v43  ;;  %v283_v43 = vpop.permute.xlu0 %282 }
 0x125   :  { %v201_v46 = vrot.slane %v200_v45, 2 }
 0x127   :  { %v202_v47 = vadd.f32 %v201_v46, %v200_v45 }
 0x129   :  { %v203_v48 = vrot.slane %v202_v47, 1 }
 0x12b   :  { %v204_v49 = vadd.f32 %v203_v48, %v202_v47  ;;  %v291_v47 = vpop.permute.xlu1 %290 }
 0x12d   :  { %v206_v50 = vmul.f32 0.03125, %v204_v49 }
 0x12f   :  { %v207_v51 = vsub.f32 %v182_v36, %v206_v50  ;;  %v208_v52 = vsub.f32 %v185_v37, %v206_v50  ;;  %v209_v53 = vsub.f32 %v190_v39, %v206_v50  ;;  %v210_v54 = vsub.f32 %v193_v41, %v206_v50  ;;  %v825_v37 = vld [vmem:[%s1047_s2 + $0x8] sm:$0xff]   ;;  %v295_v50 = vpop.permute.xlu0 %294 }
 0x130   :  { %v868_v39 = vmov 6   ;;  %v870_v41 = vmov 8  }
 0x131   :  { %v211_v55 = vmul.f32 %v207_v51, %v207_v51  ;;  %v212_v56 = vmul.f32 %v208_v52, %v208_v52  ;;  %v213_v57 = vmul.f32 %v209_v53, %v209_v53  ;;  %v214_v59 = vmul.f32 %v210_v54, %v210_v54  ;;  %805 = vset.pattern.permute.xlu1 %v868_v39 }
 0x132   :  { %806 = vset.pattern.permute.xlu0 %v868_v39  ;;  %449 = vperm.xlu1 %805, %v925_v7  }
 0x133   :  { %v215_v58 = vadd.f32 %v212_v56, %v211_v55  ;;  %453 = vperm.xlu0 %806, %v935_v9  }
 0x135   :  { %v216_v60 = vadd.f32 %v215_v58, %v213_v57 }
 0x136   :  { %457 = vperm.xlu1 %805, %v930_v8  }
 0x137   :  { %v217_v61 = vadd.f32 %v216_v60, %v214_v59  ;;  %807 = vset.pattern.permute.xlu0 %v869_v40 }
 0x138   :  { %564 = vperm.xlu0 %807, %v925_v7  }
 0x139   :  { %v218_v62 = vrot.slane %v217_v61, 4 }
 0x13a   :  { %461 = vperm.xlu1 %805, %v941_v10  }
 0x13b   :  { %v219_v63 = vadd.f32 %v218_v62, %v217_v61 }
 0x13c   :  { %810 = vset.pattern.permute.xlu0 %v870_v41 }
 0x13d   :  { %v220_v0 = vrot.slane %v219_v63, 2  ;;  %588 = vperm.xlu0 %810, %v935_v9  }
 0x13e   :  { %808 = vset.pattern.permute.xlu1 %v869_v40 }
 0x13f   :  { %v221_v2 = vadd.f32 %v220_v0, %v219_v63  ;;  %568 = vperm.xlu1 %808, %v935_v9  }
 0x141   :  { %v222_v3 = vrot.slane %v221_v2, 1  ;;  %592 = vperm.xlu0 %810, %v930_v8  }
 0x143   :  { %v223_v4 = vadd.f32 %v222_v3, %v221_v2  ;;  %809 = vset.pattern.permute.xlu1 %v870_v41 }
 0x144   :  { %584 = vperm.xlu1 %809, %v925_v7  }
 0x145   :  { %v224_v6 = vmul.f32 0.03125, %v223_v4 }
 0x147   :  { %v225_v11 = vadd.f32 1e-05, %v224_v6 }
 0x148   :  { %811 = vset.pattern.permute.xlu1 %v869_v40 }
 0x149   :  { %828 = vrsqrt.f32 %v225_v11  ;;  %572 = vperm.xlu1 %811, %v930_v8  }
 0x14d   :  { %576 = vperm.xlu1 %811, %v941_v10  }
 0x151   :  { %812 = vset.pattern.permute.xlu1 %v870_v41 }
 0x152   :  { %596 = vperm.xlu1 %812, %v941_v10  }
 0x153   :  { %v829_v16 = vpop.eup %828 }
 0x154   :  { %v228_v17 = vmul.f32 %v829_v16, %v208_v52  ;;  %v229_v18 = vmul.f32 %v829_v16, %v209_v53  ;;  %v227_v19 = vmul.f32 %v829_v16, %v207_v51  ;;  %v230_v20 = vmul.f32 %v829_v16, %v210_v54 }
 0x156   :  { %v248_v23 = vmul.f32 %v237_v1, %v228_v17  ;;  %v249_v24 = vmul.f32 %v241_v12, %v229_v18  ;;  %v247_v25 = vmul.f32 %v233_v13, %v227_v19  ;;  %v250_v26 = vmul.f32 %v245_v14, %v230_v20 }
 0x158   :  { %v267_v27 = vadd.f32 %v253_v5, %v247_v25  ;;  %v268_v28 = vadd.f32 %v257_v15, %v248_v23  ;;  %v270_v29 = vadd.f32 %v265_v21, %v250_v26  ;;  %v269_v30 = vadd.f32 %v261_v22, %v249_v24  ;;  %v399_v15 = vpop.permute.xlu1 %398  ;;  %v403_v22 = vpop.permute.xlu0 %402 }
 0x15a   :  { %v271_v31 = vmax.f32 %v267_v27, 0.0  ;;  %v272_v32 = vmax.f32 %v268_v28, 0.0  ;;  %v274_v33 = vmax.f32 %v270_v29, 0.0  ;;  %v273_v34 = vmax.f32 %v269_v30, 0.0 }
 0x15c   :  { %v280_v35 = vpack.c.bf16 %v274_v33, %v273_v34  ;;  %v279_v36 = vpack.c.bf16 %v272_v32, %v271_v31  ;;  %v419_v20 = vpop.permute.xlu1 %418  ;;  %v407_v24 = vpop.permute.xlu0 %406 }
 0x15e   :  { %744 = vmatprep.subr.bf16.mxu1 %v279_v36 }
 0x15f   :  { %745 = vmatpush3.bf16.msra.mxu1 %v279_v36 }
 0x160   :  { %746 = vmatprep.subr.bf16.mxu1 %v280_v35  ;;  %v423_v23 = vpop.permute.xlu1 %422  ;;  %v427_v32 = vpop.permute.xlu0 %426 }
 0x163   :  { %747 = vmatpush3.bf16.msra.mxu1 %v280_v35 }
 0x164   :  { %v411_v25 = vpop.permute.xlu1 %410 }
 0x166   :  { %749 = vmatmul.mubr.msk.bf16.vlgmr.msra.gmra.mrb[0].mxu1 %vm307_vm1, %v825_v37 }
 0x167   :  { %756 = vmatprep.mubr.msk.bf16.mxu1 %vm307_vm1, %v826_v38 }
 0x168   :  { %v431_v31 = vpop.permute.xlu1 %430 }
 0x239   :  { %v750_v44 = vpop.f32.mrb[0].mxu1 }
 0x23a   :  { %v348_v45 = vpop.f32.mrb[1].mxu1  ;;  %v357_v51 = vadd.f32 %v750_v44, %v291_v47  ;;  %v827_v47 = vld [vmem:[%s1047_s2 + $0x18] sm:$0xff]  }
 0x23b   :  { %v751_v46 = vpop.f32.mrb[2].mxu1  ;;  %v349_v48 = vadd.f32 %v348_v45, %v283_v43 }
 0x23c   :  { %v351_v9 = vpop.f32.mrb[3].mxu1  ;;  %v360_v53 = vadd.f32 %v751_v46, %v295_v50 }
 0x23d   :  { %v352_v49 = vadd.f32 %v351_v9, %v287_v42  ;;  %v871_v9 = vmov 0.0  }
 0x23f   :  { %v363_v52 = vadd.f32 %v352_v49, %v349_v48 }
 0x241   :  { %v364_v54 = vadd.f32 %v363_v52, %v357_v51 }
 0x243   :  { %v365_v8 = vadd.f32 %v364_v54, %v360_v53 }
 0x245   :  { %v366_v55 = vrot.slane %v365_v8, 4 }
 0x247   :  { %v367_v56 = vadd.f32 %v366_v55, %v365_v8 }
 0x249   :  { %v368_v57 = vrot.slane %v367_v56, 2 }
 0x24b   :  { %v369_v58 = vadd.f32 %v368_v57, %v367_v56 }
 0x24d   :  { %v370_v10 = vrot.slane %v369_v58, 1 }
 0x24f   :  { %v371_v59 = vadd.f32 %v370_v10, %v369_v58 }
 0x251   :  { %v372_v60 = vmul.f32 0.03125, %v371_v59 }
 0x253   :  { %v374_v61 = vsub.f32 %v352_v49, %v372_v60  ;;  %v376_v62 = vsub.f32 %v360_v53, %v372_v60  ;;  %v373_v63 = vsub.f32 %v349_v48, %v372_v60  ;;  %v375_v0 = vsub.f32 %v357_v51, %v372_v60  ;;  %v450_v49 = vpop.permute.xlu1 %449  ;;  %v454_v53 = vpop.permute.xlu0 %453 }
 0x254   :  { %v873_v48 = vmov 9  }
 0x255   :  { %v378_v1 = vmul.f32 %v374_v61, %v374_v61  ;;  %v377_v2 = vmul.f32 %v373_v63, %v373_v63  ;;  %v379_v3 = vmul.f32 %v375_v0, %v375_v0  ;;  %v380_v5 = vmul.f32 %v376_v62, %v376_v62  ;;  %813 = vset.pattern.permute.xlu0 %v873_v48 }
 0x256   :  { %611 = vperm.xlu0 %813, %v925_v7  }
 0x257   :  { %v381_v4 = vadd.f32 %v378_v1, %v377_v2  ;;  %v458_v50 = vpop.permute.xlu1 %457 }
 0x259   :  { %v382_v6 = vadd.f32 %v381_v4, %v379_v3 }
 0x25b   :  { %v383_v11 = vadd.f32 %v382_v6, %v380_v5  ;;  %v462_v10 = vpop.permute.xlu1 %461 }
 0x25d   :  { %v384_v12 = vrot.slane %v383_v11, 4 }
 0x25f   :  { %v385_v13 = vadd.f32 %v384_v12, %v383_v11 }
 0x261   :  { %v386_v14 = vrot.slane %v385_v13, 2 }
 0x263   :  { %v387_v16 = vadd.f32 %v386_v14, %v385_v13 }
 0x265   :  { %v388_v17 = vrot.slane %v387_v16, 1 }
 0x267   :  { %v389_v18 = vadd.f32 %v388_v17, %v387_v16 }
 0x269   :  { %v390_v19 = vmul.f32 0.03125, %v389_v18 }
 0x26b   :  { %v391_v21 = vadd.f32 1e-05, %v390_v19 }
 0x26d   :  { %830 = vrsqrt.f32 %v391_v21 }
 0x277   :  { %v831_v26 = vpop.eup %830 }
 0x278   :  { %v393_v27 = vmul.f32 %v831_v26, %v373_v63  ;;  %v394_v28 = vmul.f32 %v831_v26, %v374_v61  ;;  %v395_v29 = vmul.f32 %v831_v26, %v375_v0  ;;  %v396_v30 = vmul.f32 %v831_v26, %v376_v62 }
 0x27a   :  { %v413_v33 = vmul.f32 %v399_v15, %v393_v27  ;;  %v414_v34 = vmul.f32 %v403_v22, %v394_v28  ;;  %v415_v35 = vmul.f32 %v407_v24, %v395_v29  ;;  %v416_v36 = vmul.f32 %v411_v25, %v396_v30  ;;  %v569_v22 = vpop.permute.xlu1 %568  ;;  %v565_v30 = vpop.permute.xlu0 %564 }
 0x27c   :  { %v433_v37 = vadd.f32 %v419_v20, %v413_v33  ;;  %v434_v38 = vadd.f32 %v423_v23, %v414_v34  ;;  %v436_v39 = vadd.f32 %v431_v31, %v416_v36  ;;  %v435_v40 = vadd.f32 %v427_v32, %v415_v35 }
 0x27e   :  { %v437_v41 = vmax.f32 %v433_v37, 0.0  ;;  %v438_v42 = vmax.f32 %v434_v38, 0.0  ;;  %v440_v43 = vmax.f32 %v436_v39, 0.0  ;;  %v439_v44 = vmax.f32 %v435_v40, 0.0  ;;  %v585_v26 = vpop.permute.xlu1 %584  ;;  %v589_v32 = vpop.permute.xlu0 %588 }
 0x280   :  { %v447_v45 = vpack.c.bf16 %v440_v43, %v439_v44  ;;  %v446_v46 = vpack.c.bf16 %v438_v42, %v437_v41 }
 0x282   :  { %752 = vmatprep.subr.bf16.mxu1 %v446_v46  ;;  %v573_v29 = vpop.permute.xlu1 %572  ;;  %v593_v39 = vpop.permute.xlu0 %592 }
 0x283   :  { %753 = vmatpush3.bf16.msra.mxu1 %v446_v46 }
 0x284   :  { %754 = vmatprep.subr.bf16.mxu1 %v447_v45 }
 0x286   :  { %v577_v31 = vpop.permute.xlu1 %576 }
 0x287   :  { %755 = vmatpush3.bf16.msra.mxu1 %v447_v45 }
 0x288   :  { %760 = vmatprep.subr.bf16.mxu1 %v871_v9 }
 0x28a   :  { %757 = vmatmul.mubr.msk.bf16.vlgmr.msra.gmra.mrb[4].mxu1 %vm307_vm1, %v827_v47  ;;  %v597_v38 = vpop.permute.xlu1 %596 }
 0x28b   :  { %764 = vmatprep.mubr.msk.bf16.mxu1 %vm872_vm2, %v871_v9 }
 0x35d   :  { %v758_v51 = vpop.f32.mrb[4].mxu1 }
 0x35e   :  { %v514_v52 = vpop.f32.mrb[5].mxu1  ;;  %v523_v57 = vadd.f32 %v758_v51, %v458_v50 }
 0x35f   :  { %v759_v54 = vpop.f32.mrb[6].mxu1  ;;  %v515_v55 = vadd.f32 %v514_v52, %v450_v49 }
 0x360   :  { %v517_v8 = vpop.f32.mrb[7].mxu1  ;;  %v526_v59 = vadd.f32 %v759_v54, %v462_v10  ;;  %v607_v54 = vld [vmem:[%s1048_s3] sm:$0xf]  ;;  %s838_s3 = scalar_lea.vmem %s671_s28, 128 }
 0x361   :  { %v518_v56 = vadd.f32 %v517_v8, %v454_v53  ;;  %v612_v8 = vpop.permute.xlu0 %611  ;;  %p839_p0 = scmp.ne.s32.totalorder %s671_s28, %s838_s3  ;;  %p844_p2 = scmp.lt.s32.totalorder %s838_s3, %s838_s3 }
 0x363   :  { %v529_v58 = vadd.f32 %v518_v56, %v515_v55  ;;  %p845_p3 = por %p844_p2, %p843_p1 }
 0x365   :  { %v530_v60 = vadd.f32 %v529_v58, %v523_v57  ;;  %p846_p4 = pnand %p845_p3, %p839_p0 }
 0x367   :  { %v531_v61 = vadd.f32 %v530_v60, %v526_v59 }
 0x369   :  { %v532_v62 = vrot.slane %v531_v61, 4 }
 0x36b   :  { %v533_v63 = vadd.f32 %v532_v62, %v531_v61 }
 0x36d   :  { %v534_v0 = vrot.slane %v533_v63, 2 }
 0x36f   :  { %v535_v1 = vadd.f32 %v534_v0, %v533_v63 }
 0x371   :  { %v536_v7 = vrot.slane %v535_v1, 1 }
 0x373   :  { %v537_v2 = vadd.f32 %v536_v7, %v535_v1 }
 0x375   :  { %v538_v3 = vmul.f32 0.03125, %v537_v2 }
 0x377   :  { %v539_v4 = vsub.f32 %v515_v55, %v538_v3  ;;  %v540_v5 = vsub.f32 %v518_v56, %v538_v3  ;;  %v541_v6 = vsub.f32 %v523_v57, %v538_v3  ;;  %v542_v11 = vsub.f32 %v526_v59, %v538_v3 }
 0x379   :  { %v543_v12 = vmul.f32 %v539_v4, %v539_v4  ;;  %v544_v13 = vmul.f32 %v540_v5, %v540_v5  ;;  %v545_v14 = vmul.f32 %v541_v6, %v541_v6  ;;  %v546_v16 = vmul.f32 %v542_v11, %v542_v11 }
 0x37b   :  { %v547_v15 = vadd.f32 %v544_v13, %v543_v12 }
 0x37d   :  { %v548_v17 = vadd.f32 %v547_v15, %v545_v14 }
 0x37f   :  { %v549_v18 = vadd.f32 %v548_v17, %v546_v16 }
 0x381   :  { %v550_v19 = vrot.slane %v549_v18, 4 }
 0x383   :  { %v551_v20 = vadd.f32 %v550_v19, %v549_v18 }
 0x385   :  { %v552_v21 = vrot.slane %v551_v20, 2 }
 0x387   :  { %v553_v23 = vadd.f32 %v552_v21, %v551_v20 }
 0x389   :  { %v554_v24 = vrot.slane %v553_v23, 1 }
 0x38b   :  { %v555_v25 = vadd.f32 %v554_v24, %v553_v23 }
 0x38d   :  { %v556_v27 = vmul.f32 0.03125, %v555_v25 }
 0x38f   :  { %v557_v28 = vadd.f32 1e-05, %v556_v27 }
 0x391   :  { %832 = vrsqrt.f32 %v557_v28 }
 0x39b   :  { %v833_v33 = vpop.eup %832 }
 0x39c   :  { %v560_v34 = vmul.f32 %v833_v33, %v540_v5  ;;  %v561_v35 = vmul.f32 %v833_v33, %v541_v6  ;;  %v559_v36 = vmul.f32 %v833_v33, %v539_v4  ;;  %v562_v37 = vmul.f32 %v833_v33, %v542_v11 }
 0x39e   :  { %v580_v40 = vmul.f32 %v569_v22, %v560_v34  ;;  %v581_v41 = vmul.f32 %v573_v29, %v561_v35  ;;  %v579_v42 = vmul.f32 %v565_v30, %v559_v36  ;;  %v582_v43 = vmul.f32 %v577_v31, %v562_v37 }
 0x3a0   :  { %v599_v44 = vadd.f32 %v585_v26, %v579_v42  ;;  %v600_v45 = vadd.f32 %v589_v32, %v580_v40  ;;  %v602_v46 = vadd.f32 %v597_v38, %v582_v43  ;;  %v601_v47 = vadd.f32 %v593_v39, %v581_v41 }
 0x3a2   :  { %v603_v48 = vmax.f32 %v599_v44, 0.0  ;;  %v604_v49 = vmax.f32 %v600_v45, 0.0  ;;  %v606_v50 = vmax.f32 %v602_v46, 0.0  ;;  %v605_v51 = vmax.f32 %v601_v47, 0.0 }
 0x3a4   :  { %v608_v52 = vpack.c.bf16 %v604_v49, %v603_v48  ;;  %v609_v53 = vpack.c.bf16 %v606_v50, %v605_v51 }
 0x3a6   :  { %761 = vmatpush3.bf16.msra.mxu1 %v608_v52 }
 0x3a7   :  { %762 = vmatprep.subr.bf16.mxu1 %v871_v9 }
 0x3aa   :  { %763 = vmatpush3.bf16.msra.mxu1 %v609_v53 }
 0x3ad   :  { %765 = vmatmul.mubr.msk.bf16.vlgmr.msra.gmra.mrb[8].mxu1 %vm307_vm1, %v607_v54 }
 0x480   :  { %v651_v55 = vpop.f32.mrb[8].mxu1 }
 0x481   :  { %v766_v56 = vpop.f32.mrb[9].mxu1  ;;  %v652_v57 = vadd.f32 %v651_v55, %v612_v8 }
 0x482   :  { %v654_v58 = vpop.f32.mrb[10].mxu1 }
 0x483   :  { %v657_v10 = vsub.f32 0.0, %v652_v57  ;;  %v767_v59 = vpop.f32.mrb[11].mxu1 }
 0x485   :  { %v658_v60 = vmul.f32 1.442695, %v657_v10 }
 0x487   :  { %834 = vpow2.f32 %v658_v60 }
 0x491   :  { %v835_v61 = vpop.eup %834 }
 0x492   :  { %v660_v62 = vadd.f32 1.0, %v835_v61 }
 0x494   :  { %836 = vrcp.f32 %v660_v62 }
 0x49e   :  { %v837_v9 = vpop.eup %836 }
 0x49f   :  { %663 = vst [vmem:[#allocation2] sm:$0xff] %v837_v9 }
 0x4a0   :  { %849 = shalt.err (!%p846_p4)
}
 0x4a1   :  { %s850_s6 = scalar_lea.hbm %s1050_s5, 128 }
 0x4a2   :  { %p851_p5 = scmp.ne.s32.totalorder %s1050_s5, %s850_s6  ;;  %p854_p6 = scmp.lt.u32.totalorder %s850_s6, %s1050_s5 }
 0x4a4   :  { %p856_p7 = pnand %p854_p6, %p851_p5 }
 0x4a6   :  { %859 = shalt.err (!%p856_p7)
}
 0x4a7   :  { %673 = dma.vmem_to_hbm [thread:$0]  %s671_s28, 128, %s1050_s5, [#allocation3]  }
 0x4a8   :  { %860 = dma.done.wait [#allocation3], 128  }
 0x4a9   :  { %861 = vsyncadd [#allocation3], 4294967168 }
 0x4aa   :  { %677 = vsyncpa [#allocation3], 1 }

</bundles_post_ra>
